<compile_context>
chip_gen: v6e
topology: v6e:2x2x1
jax: 0.10.0
libtpu: 0.0.40
codegen_flags: <defaults>
</compile_context>

<pallas_src>
import functools

import jax
import jax.numpy as jnp
from jax.experimental import pallas as pl
from jax.experimental.pallas import tpu as pltpu


# ----------------------------------------------------------------------------
# Helpers
# ----------------------------------------------------------------------------
def _round_up(x, m):
    return (x + m - 1) // m * m


def _pick_divisor_tile(dim, cap, quantum):
    """Largest tile <= cap that evenly divides `dim` and is a multiple of
    `quantum`; returns the full dim when dim <= cap."""
    if dim <= cap:
        return dim
    t = (cap // quantum) * quantum
    while t >= quantum:
        if dim % t == 0:
            return t
        t -= quantum
    return dim


def _pick_time_chunk(T):
    # Whole sequence in one grid step when small; otherwise amortize the
    # ~0.35us per-grid-step overhead over many timesteps.
    if T <= 32:
        return T
    for tc in (32, 16, 8):
        if T % tc == 0:
            return tc
    return T


def _vmem_budget():
    """(projection M-tile cap, vmem_limit_bytes), re-derived per generation."""
    try:
        vmem = pltpu.get_tpu_info().vmem_capacity_bytes
    except Exception:
        vmem = 64 * 1024 * 1024
    if vmem >= 96 * 1024 * 1024:          # v5e / v6e: 128 MiB physical VMEM
        return 1024, 64 * 1024 * 1024
    return 512, 32 * 1024 * 1024          # v7x: 64 MiB per-TC VMEM


# ----------------------------------------------------------------------------
# Kernel 1: hoisted layer-0 input projection  G0 = x @ Wih0^T + b0
# ----------------------------------------------------------------------------
def _proj_kernel(x_ref, w_ref, b_ref, o_ref, *, compute_dtype):
    k = pl.program_id(1)

    @pl.when(k == 0)
    def _():
        # Initialize the resident output tile with the fused bias; the k axis
        # then accumulates partial products directly into it (no acc scratch).
        o_ref[...] = jnp.broadcast_to(b_ref[...], o_ref.shape)

    o_ref[...] += jnp.dot(x_ref[...].astype(compute_dtype), w_ref[...],
                          preferred_element_type=jnp.float32)


def _input_projection(x2d, w, b, *, compute_dtype, tm_cap, vmem_limit):
    M, K = x2d.shape
    N = w.shape[1]

    tm = min(tm_cap, _round_up(M, 8))
    Mp = _round_up(M, tm)
    if Mp != M:                       # pad M instead of staging a huge tile
        x2d = jnp.pad(x2d, ((0, Mp - M), (0, 0)))
    tk = _pick_divisor_tile(K, 512, 128)

    kernel = functools.partial(_proj_kernel, compute_dtype=compute_dtype)
    out = pl.pallas_call(
        kernel,
        out_shape=jax.ShapeDtypeStruct((Mp, N), jnp.float32),
        grid_spec=pltpu.PrefetchScalarGridSpec(
            num_scalar_prefetch=0,
            grid=(Mp // tm, K // tk),
            in_specs=[
                pl.BlockSpec((tm, tk), lambda i, k: (i, k)),
                pl.BlockSpec((tk, N), lambda i, k: (k, 0)),
                pl.BlockSpec((1, N), lambda i, k: (0, 0)),
            ],
            out_specs=pl.BlockSpec((tm, N), lambda i, k: (i, 0)),
        ),
        compiler_params=pltpu.CompilerParams(
            dimension_semantics=("parallel", "arbitrary"),
            vmem_limit_bytes=vmem_limit,
        ),
    )(x2d, w.astype(compute_dtype), b)
    return out[:M] if Mp != M else out


# ----------------------------------------------------------------------------
# Kernel 2: sequential 2-layer recurrence over chunks of the time axis
# ----------------------------------------------------------------------------
def _recurrent_kernel(g0_ref, whh0_ref, w1_ref, b1_ref, out_ref,
                      h0_ref, c0_ref, h1_ref, c1_ref,
                      *, tc, hidden, compute_dtype):
    step = pl.program_id(0)
    H = hidden

    # Zero-initialize carried state (nn.LSTM default h_0 = c_0 = 0).
    @pl.when(step == 0)
    def _():
        h0_ref[...] = jnp.zeros_like(h0_ref)
        c0_ref[...] = jnp.zeros_like(c0_ref)
        h1_ref[...] = jnp.zeros_like(h1_ref)
        c1_ref[...] = jnp.zeros_like(c1_ref)

    # Load carried state ONCE per chunk into values; no per-timestep VMEM
    # round-trips on the serial critical path.
    h0 = h0_ref[...]
    c0 = c0_ref[...]
    h1 = h1_ref[...]
    c1 = c1_ref[...]

    b1 = b1_ref[...]                  # (1, 4H), broadcasts in the add

    def gates_to_hc(gates, c_prev):
        # PyTorch gate order: i, f, g, o.
        i = jax.nn.sigmoid(gates[:, 0 * H:1 * H])
        f = jax.nn.sigmoid(gates[:, 1 * H:2 * H])
        g = jnp.tanh(gates[:, 2 * H:3 * H])
        o = jax.nn.sigmoid(gates[:, 3 * H:4 * H])
        c_new = f * c_prev + i * g
        h_new = o * jnp.tanh(c_new)
        return h_new, c_new

    for t in range(tc):  # statically unrolled time loop over this chunk
        # ---- layer 0: input gates precomputed (time-major, contiguous read);
        #      only the recurrent matmul remains.
        gates0 = g0_ref[t] + jnp.dot(h0.astype(compute_dtype), whh0_ref[...],
                                     preferred_element_type=jnp.float32)
        h0, c0 = gates_to_hc(gates0, c0)

        # ---- layer 1: two matmuls on static slices of the stacked weight
        #      (no VMEM staging of [h0, h1]; the h1 partial is independent of
        #      h0_t, so the scheduler can overlap it with layer 0).
        gates1 = (jnp.dot(h1.astype(compute_dtype), w1_ref[H:2 * H, :],
                          preferred_element_type=jnp.float32)
                  + jnp.dot(h0.astype(compute_dtype), w1_ref[0:H, :],
                            preferred_element_type=jnp.float32)
                  + b1)
        h1, c1 = gates_to_hc(gates1, c1)

    # Write carried state back ONCE per chunk.
    h0_ref[...] = h0
    c0_ref[...] = c0
    h1_ref[...] = h1
    c1_ref[...] = c1

    # hn[-1] == last layer's hidden state at the final timestep.
    @pl.when(step == pl.num_programs(0) - 1)
    def _():
        out_ref[...] = h1


# ----------------------------------------------------------------------------
# Wrapper
# ----------------------------------------------------------------------------
def player_lstm_forward(x, params, *, compute_dtype=jnp.bfloat16,
                        time_chunk=None):
    """x: (B, T, I) f32.  Returns hn[-1]: (B, H) f32 (PlayerLSTM.forward)."""
    B, T, I = x.shape
    H = params["whh0"].shape[0]
    assert H % 128 == 0, "hidden size must be lane-aligned (multiple of 128)"

    tm_cap, vmem_limit = _vmem_budget()

    # (1) Hoisted layer-0 input projection, TIME-MAJOR so the recurrence reads
    # a contiguous (B, 4H) slab per timestep.
    xt = jnp.swapaxes(x, 0, 1).reshape(T * B, I)          # (T*B, I)
    g0 = _input_projection(xt, params["wih0"], params["b0"],
                           compute_dtype=compute_dtype,
                           tm_cap=tm_cap, vmem_limit=vmem_limit)
    g0 = g0.reshape(T, B, 4 * H)

    # (2) Sequential recurrence, chunked over time.
    tc = time_chunk if time_chunk is not None else _pick_time_chunk(T)
    assert T % tc == 0, (T, tc)
    kernel = functools.partial(_recurrent_kernel, tc=tc, hidden=H,
                               compute_dtype=compute_dtype)

    full = lambda shape: pl.BlockSpec(shape, lambda s: tuple(0 for _ in shape))

    grid_spec = pltpu.PrefetchScalarGridSpec(
        num_scalar_prefetch=0,
        grid=(T // tc,),
        in_specs=[
            pl.BlockSpec((tc, B, 4 * H), lambda s: (s, 0, 0)),  # time-major G0
            full((H, 4 * H)),        # W_hh_l0^T              (loop-invariant)
            full((2 * H, 4 * H)),    # [W_ih_l1^T ; W_hh_l1^T] (loop-invariant)
            full((1, 4 * H)),        # b_ih_l1 + b_hh_l1
        ],
        out_specs=pl.BlockSpec((B, H), lambda s: (0, 0)),
        scratch_shapes=[
            pltpu.VMEM((B, H), jnp.float32),   # h0 (cross-chunk carry only)
            pltpu.VMEM((B, H), jnp.float32),   # c0
            pltpu.VMEM((B, H), jnp.float32),   # h1
            pltpu.VMEM((B, H), jnp.float32),   # c1
        ],
    )

    return pl.pallas_call(
        kernel,
        out_shape=jax.ShapeDtypeStruct((B, H), jnp.float32),
        grid_spec=grid_spec,
        compiler_params=pltpu.CompilerParams(
            dimension_semantics=("arbitrary",),   # time recurrence is serial
            vmem_limit_bytes=vmem_limit,
        ),
    )(g0,
      params["whh0"].astype(compute_dtype),
      params["w1"].astype(compute_dtype),
      params["b1"])


# ----------------------------------------------------------------------------
# Pure-JAX reference + synthetic params
# ----------------------------------------------------------------------------
def player_lstm_ref(x, params):
    B = x.shape[0]
    H = params["whh0"].shape[0]
    hp = jax.lax.Precision.HIGHEST

    def run_layer(xs, wih_t, whh_t, b):
        def step(carry, x_t):
            h, c = carry
            gates = (jnp.dot(x_t, wih_t, precision=hp)
                     + jnp.dot(h, whh_t, precision=hp) + b[0])
            i, f, g, o = jnp.split(gates, 4, axis=-1)
            i, f, o = jax.nn.sigmoid(i), jax.nn.sigmoid(f), jax.nn.sigmoid(o)
            g = jnp.tanh(g)
            c = f * c + i * g
            h = o * jnp.tanh(c)
            return (h, c), h
        init = (jnp.zeros((B, H), jnp.float32), jnp.zeros((B, H), jnp.float32))
        (hT, _), hs = jax.lax.scan(step, init, jnp.swapaxes(xs, 0, 1))
        return jnp.swapaxes(hs, 0, 1), hT

    out0, _ = run_layer(x, params["wih0"], params["whh0"], params["b0"])
    wih1_t, whh1_t = params["w1"][:H], params["w1"][H:]
    _, h1T = run_layer(out0, wih1_t, whh1_t, params["b1"])
    return h1T


def make_params(key, input_size, hidden_size):
    """Synthetic 2-layer LSTM weights (PyTorch layout), pre-arranged:
      wih0 : (I, 4H)   = W_ih_l0^T
      b0   : (1, 4H)   = b_ih_l0 + b_hh_l0   (folded into the input projection)
      whh0 : (H, 4H)   = W_hh_l0^T
      w1   : (2H, 4H)  = [W_ih_l1^T ; W_hh_l1^T]  (stacked, static-sliced)
      b1   : (1, 4H)   = b_ih_l1 + b_hh_l1
    """
    ks = jax.random.split(key, 6)
    s = 0.1
    H = hidden_size
    wih1_t = s * jax.random.normal(ks[3], (H, 4 * H), jnp.float32)
    whh1_t = s * jax.random.normal(ks[4], (H, 4 * H), jnp.float32)
    return {
        "wih0": s * jax.random.normal(ks[0], (input_size, 4 * H), jnp.float32),
        "whh0": s * jax.random.normal(ks[1], (H, 4 * H), jnp.float32),
        "b0":   s * jax.random.normal(ks[2], (1, 4 * H), jnp.float32),
        "w1":   jnp.concatenate([wih1_t, whh1_t], axis=0),
        "b1":   s * jax.random.normal(ks[5], (1, 4 * H), jnp.float32),
    }
    # TODO(synk): self.fc (Linear(hidden, num_classes)) is defined in __init__
    # but never used in forward(), so it is intentionally not implemented.


if __name__ == "__main__":
    # Small shapes consistent with the module (scaled down from 2048/512).
    B, T, I, H = 8, 8, 128, 128

    key = jax.random.PRNGKey(0)
    k_x, k_p = jax.random.split(key)
    x = jax.random.normal(k_x, (B, T, I), jnp.float32)
    params = make_params(k_p, I, H)

    ref = jax.block_until_ready(player_lstm_ref(x, params))

    # Default path: bf16 matmuls, f32 state / accumulation / activations.
    out = jax.block_until_ready(player_lstm_forward(x, params))
    assert out.shape == (B, H), out.shape
    assert jnp.all(jnp.isfinite(out))
    err = float(jnp.max(jnp.abs(out - ref)))
    assert err < 5e-2, err

    # Full-f32 path (tighter tolerance).
    out_f32 = jax.block_until_ready(
        player_lstm_forward(x, params, compute_dtype=jnp.float32))
    assert jnp.all(jnp.isfinite(out_f32))
    err_f32 = float(jnp.max(jnp.abs(out_f32 - ref)))
    assert err_f32 < 2e-2, err_f32

    print("KERNEL_OK")
</pallas_src>

<mosaic_0001>
module attributes {stable_mosaic.version = 11 : i64} {
  func.func @_proj_kernel(%arg0: i32, %arg1: i32, %arg2: memref<64x128xf32, #tpu.memory_space<vmem>>, %arg3: memref<128x512xbf16, #tpu.memory_space<vmem>>, %arg4: memref<1x512xf32, #tpu.memory_space<vmem>>, %arg5: memref<64x512xf32, #tpu.memory_space<vmem>>) attributes {dimension_semantics = [#tpu.dimension_semantics<parallel>, #tpu.dimension_semantics<arbitrary>], iteration_bounds = array<i64: 1, 1>, scalar_prefetch = 0 : i64, scratch_operands = 0 : i64, tpu.core_type = #tpu.core_type<tc>, window_params = [{transform_indices = @transform_0, window_bounds = array<i64: 64, 128>}, {transform_indices = @transform_1, window_bounds = array<i64: 128, 512>}, {pipeline_mode = #tpu.pipeline_mode<synchronous>, transform_indices = @transform_2, window_bounds = array<i64: 1, 512>}, {transform_indices = @transform_3, window_bounds = array<i64: 64, 512>}]} {
    %c0_i32 = arith.constant 0 : i32
    %0 = arith.cmpi eq, %arg1, %c0_i32 : i32
    %1 = arith.extui %0 : i1 to i32
    %c0_i32_0 = arith.constant 0 : i32
    %2 = arith.cmpi ne, %1, %c0_i32_0 : i32
    scf.if %2 {
      %c0_8 = arith.constant 0 : index
      %c0_9 = arith.constant 0 : index
      %10 = vector.load %arg4[%c0_8, %c0_9] : memref<1x512xf32, #tpu.memory_space<vmem>>, vector<1x512xf32>
      %11 = vector.shape_cast %10 : vector<1x512xf32> to vector<1x512xf32>
      %12 = vector.broadcast %11 : vector<1x512xf32> to vector<64x512xf32>
      %c0_10 = arith.constant 0 : index
      %c0_11 = arith.constant 0 : index
      %13 = vector.load %arg5[%c0_10, %c0_11] : memref<64x512xf32, #tpu.memory_space<vmem>>, vector<64x512xf32>
      tpu.vector_store %arg5[%c0_10, %c0_11], %12 {strides = array<i32>} : memref<64x512xf32, #tpu.memory_space<vmem>>, vector<64x512xf32>,
    } else {
    }
    %c0 = arith.constant 0 : index
    %c0_1 = arith.constant 0 : index
    %3 = vector.load %arg5[%c0, %c0_1] : memref<64x512xf32, #tpu.memory_space<vmem>>, vector<64x512xf32>
    %c0_2 = arith.constant 0 : index
    %c0_3 = arith.constant 0 : index
    %4 = vector.load %arg2[%c0_2, %c0_3] : memref<64x128xf32, #tpu.memory_space<vmem>>, vector<64x128xf32>
    %5 = arith.truncf %4 : vector<64x128xf32> to vector<64x128xbf16>
    %c0_4 = arith.constant 0 : index
    %c0_5 = arith.constant 0 : index
    %6 = vector.load %arg3[%c0_4, %c0_5] : memref<128x512xbf16, #tpu.memory_space<vmem>>, vector<128x512xbf16>
    %cst = arith.constant dense<0.000000e+00> : vector<64x512xf32>
    %7 = tpu.matmul %5, %6, %cst {dimension_numbers = #tpu.dot_dimension_numbers<[1], [0], [0], [1], [0, 0, 1, 1], [], []>} : vector<64x128xbf16>, vector<128x512xbf16>, vector<64x512xf32> -> vector<64x512xf32>
    %8 = arith.addf %3, %7 : vector<64x512xf32>
    %c0_6 = arith.constant 0 : index
    %c0_7 = arith.constant 0 : index
    %9 = vector.load %arg5[%c0_6, %c0_7] : memref<64x512xf32, #tpu.memory_space<vmem>>, vector<64x512xf32>
    tpu.vector_store %arg5[%c0_6, %c0_7], %8 {strides = array<i32>} : memref<64x512xf32, #tpu.memory_space<vmem>>, vector<64x512xf32>,
    return
  }
  func.func @transform_0(%arg0: i32, %arg1: i32) -> (i32, i32) {
    %c0_i32 = arith.constant 0 : i32
    return %arg0, %arg1 : i32, i32
  }
  func.func @transform_1(%arg0: i32, %arg1: i32) -> (i32, i32) {
    %c0_i32 = arith.constant 0 : i32
    %c0_i32_0 = arith.constant 0 : i32
    return %arg1, %c0_i32 : i32, i32
  }
  func.func @transform_2(%arg0: i32, %arg1: i32) -> (i32, i32) {
    %c0_i32 = arith.constant 0 : i32
    %c0_i32_0 = arith.constant 0 : i32
    %c0_i32_1 = arith.constant 0 : i32
    return %c0_i32, %c0_i32_0 : i32, i32
  }
  func.func @transform_3(%arg0: i32, %arg1: i32) -> (i32, i32) {
    %c0_i32 = arith.constant 0 : i32
    %c0_i32_0 = arith.constant 0 : i32
    return %arg0, %c0_i32 : i32, i32
  }
}

</mosaic_0001>

<bundles_post_ra>
// kernel: tpu_custom_call.1
= control target key start
LH: loop header
LB: loop body
LE: loop exit
PB: predicated region body
PF: predicated region fallthrough
CT: control target
= control target key end

     0   :  { %8 = vsyncpa [#allocation3], 0  ;;  %s845_s0 = inlined_call_operand.hbm [shape: f32[64,128], index: 0, kind: input, shape index: {}]   ;;  %s846_s1 = inlined_call_operand.hbm [shape: bf16[128,512], index: 1, kind: input, shape index: {}]   ;;  %s847_s2 = inlined_call_operand.hbm [shape: f32[1,512], index: 2, kind: input, shape index: {}]   ;;  %s848_s3 = inlined_call_operand.hbm [shape: f32[64,512], index: 3, kind: output, shape index: {}]  }
   0x1   :  { %9 = vsyncpa [#allocation6], 0 }
   0x2   :  { %10 = vsyncpa [#allocation4], 0  ;;  %s754_s12 = smov [#allocation5]  }
   0x3   :  { %s28_s13 = sshll.u32 %s754_s12, 4  ;;  %s29_s13 = int_to_ptr.vmem [resolvable:$true] %s28_s13 }
   0x4   :  { %s676_s14 = scalar_lea.vmem %s29_s13, 4096  ;;  %p681_p1 = scmp.lt.s32.totalorder %s29_s13, %s29_s13 }
   0x5   :  { %p677_p0 = scmp.ne.s32.totalorder %s29_s13, %s676_s14  ;;  %p682_p2 = scmp.lt.s32.totalorder %s676_s14, %s676_s14 }
   0x7   :  { %p683_p3 = por %p682_p2, %p681_p1 }
   0x9   :  { %p684_p4 = pnand %p683_p3, %p677_p0 }
   0xb   :  { %687 = shalt.err (!%p684_p4)
}
   0xc   :  { %s755_s15 = smov 256   ;;  %s756_s16 = smov 16  }
   0xd   :  { %34 = dma.hbm_to_vmem [thread:$0]  %s846_s1, 4096, %s29_s13, [#allocation6], %s755_s15, %s755_s15, %s756_s16  }
   0xe   :  { %s757_s19 = smov [#allocation2]  }
   0xf   :  { %s16_s20 = sshll.u32 %s757_s19, 4  ;;  %s17_s20 = int_to_ptr.vmem [resolvable:$true] %s16_s20 }
  0x10   :  { %s696_s21 = scalar_lea.vmem %s17_s20, 1024  ;;  %p701_p6 = scmp.lt.s32.totalorder %s17_s20, %s17_s20 }
  0x11   :  { %p697_p5 = scmp.ne.s32.totalorder %s17_s20, %s696_s21  ;;  %p702_p7 = scmp.lt.s32.totalorder %s696_s21, %s696_s21 }
  0x13   :  { %p703_p8 = por %p702_p7, %p701_p6 }
  0x15   :  { %p704_p9 = pnand %p703_p8, %p697_p5 }
  0x17   :  { %707 = shalt.err (!%p704_p9)
}
  0x18   :  { %s758_s22 = smov 128   ;;  %s759_s23 = smov 8  }
  0x19   :  { %22 = dma.hbm_to_vmem [thread:$0]  %s845_s0, 1024, %s17_s20, [#allocation3], %s758_s22, %s758_s22, %s759_s23  }
  0x1a   :  { %s760_s26 = smov [#allocation7]  }
  0x1b   :  { %s41_s27 = sshll.u32 %s760_s26, 4  ;;  %s42_s27 = int_to_ptr.vmem [resolvable:$true] %s41_s27 }
  0x1c   :  { %s716_s1 = scalar_lea.vmem %s42_s27, 64  ;;  %p721_p11 = scmp.lt.s32.totalorder %s42_s27, %s42_s27 }
  0x1d   :  { %p717_p10 = scmp.ne.s32.totalorder %s42_s27, %s716_s1  ;;  %p722_p12 = scmp.lt.s32.totalorder %s716_s1, %s716_s1 }
  0x1f   :  { %p723_p13 = por %p722_p12, %p721_p11 }
  0x21   :  { %p724_p0 = pnand %p723_p13, %p717_p10 }
  0x23   :  { %727 = shalt.err (!%p724_p0)
}
  0x24   :  { %44 = dma.hbm_to_vmem [thread:$0]  %s847_s2, 64, %s42_s27, [#allocation6]  }
  0x25   :  { %748 = dma.done.wait [#allocation3], 1024  }
  0x26   :  { %749 = vsyncadd [#allocation3], 4294966272 }
  0x27   :  { %750 = dma.done.wait [#allocation6], 4160  }
  0x28   :  { %751 = vsyncadd [#allocation6], 4294963136  ;;  %v761_v0 = vmov 0   ;;  %v620_v1 = vld [vmem:[#allocation5 + $0xe4] ss:$16 sps:$4 sm:$0xff]   ;;  %v146_v34 = vld [vmem:[#allocation2 + $0x8] sm:$0xff]  ;;  %v61_v45 = vlaneseq }
  0x29   :  { %381 = vmatprep.mubr.bf16.mxu0 %v761_v0  ;;  %454 = vmatprep.mubr.bf16.mxu1 %v761_v0  ;;  %v622_v2 = vld [vmem:[#allocation5 + $0xec] ss:$16 sps:$4 sm:$0xff]   ;;  %v624_v3 = vld [vmem:[#allocation5 + $0xe0] ss:$16 sps:$4 sm:$0xff]   ;;  %v625_v4 = vld [vmem:[#allocation5 + $0xe8] ss:$16 sps:$4 sm:$0xff]  }
  0x2a   :  { %349 = vmatprep.subr.bf16.mxu0 %v620_v1  ;;  %422 = vmatprep.subr.bf16.mxu1 %v622_v2  ;;  %v626_v5 = vld [vmem:[#allocation5 + $0xc4] ss:$16 sps:$4 sm:$0xff]   ;;  %v628_v6 = vld [vmem:[#allocation5 + $0xcc] ss:$16 sps:$4 sm:$0xff]   ;;  %v630_v7 = vld [vmem:[#allocation5 + $0xc0] ss:$16 sps:$4 sm:$0xff]  }
  0x2b   :  { %350 = vmatpush1.bf16.msra.mxu0 %v624_v3  ;;  %423 = vmatpush1.bf16.msra.mxu1 %v625_v4  ;;  %v631_v8 = vld [vmem:[#allocation5 + $0xc8] ss:$16 sps:$4 sm:$0xff]   ;;  %v632_v9 = vld [vmem:[#allocation5 + $0xa4] ss:$16 sps:$4 sm:$0xff]   ;;  %v634_v10 = vld [vmem:[#allocation5 + $0xac] ss:$16 sps:$4 sm:$0xff]  }
  0x2c   :  { %351 = vmatprep.subr.bf16.mxu0 %v626_v5  ;;  %424 = vmatprep.subr.bf16.mxu1 %v628_v6  ;;  %v636_v11 = vld [vmem:[#allocation5 + $0xa0] ss:$16 sps:$4 sm:$0xff]   ;;  %v637_v12 = vld [vmem:[#allocation5 + $0xa8] ss:$16 sps:$4 sm:$0xff]   ;;  %v638_v13 = vld [vmem:[#allocation5 + $0x84] ss:$16 sps:$4 sm:$0xff]  }
  0x2d   :  { %v640_v14 = vld [vmem:[#allocation5 + $0x8c] ss:$16 sps:$4 sm:$0xff]   ;;  %v642_v15 = vld [vmem:[#allocation5 + $0x80] ss:$16 sps:$4 sm:$0xff]   ;;  %v643_v16 = vld [vmem:[#allocation5 + $0x88] ss:$16 sps:$4 sm:$0xff]  }
  0x2e   :  { %v644_v17 = vld [vmem:[#allocation5 + $0x64] ss:$16 sps:$4 sm:$0xff]   ;;  %v646_v18 = vld [vmem:[#allocation5 + $0x6c] ss:$16 sps:$4 sm:$0xff]   ;;  %v648_v19 = vld [vmem:[#allocation5 + $0x60] ss:$16 sps:$4 sm:$0xff]  }
  0x2f   :  { %352 = vmatpush1.bf16.msra.mxu0 %v630_v7  ;;  %425 = vmatpush1.bf16.msra.mxu1 %v631_v8  ;;  %v649_v20 = vld [vmem:[#allocation5 + $0x68] ss:$16 sps:$4 sm:$0xff]   ;;  %v650_v21 = vld [vmem:[#allocation5 + $0x44] ss:$16 sps:$4 sm:$0xff]   ;;  %v652_v22 = vld [vmem:[#allocation5 + $0x4c] ss:$16 sps:$4 sm:$0xff]  }
  0x30   :  { %353 = vmatprep.subr.bf16.mxu0 %v632_v9  ;;  %426 = vmatprep.subr.bf16.mxu1 %v634_v10  ;;  %v654_v23 = vld [vmem:[#allocation5 + $0x40] ss:$16 sps:$4 sm:$0xff]   ;;  %v655_v24 = vld [vmem:[#allocation5 + $0x48] ss:$16 sps:$4 sm:$0xff]   ;;  %v656_v25 = vld [vmem:[#allocation5 + $0x24] ss:$16 sps:$4 sm:$0xff]  }
  0x31   :  { %v658_v26 = vld [vmem:[#allocation5 + $0x2c] ss:$16 sps:$4 sm:$0xff]   ;;  %v660_v27 = vld [vmem:[#allocation5 + $0x20] ss:$16 sps:$4 sm:$0xff]   ;;  %v661_v28 = vld [vmem:[#allocation5 + $0x28] ss:$16 sps:$4 sm:$0xff]  }
  0x32   :  { %v662_v29 = vld [vmem:[#allocation5 + $0x4] ss:$16 sps:$4 sm:$0xff]   ;;  %v664_v30 = vld [vmem:[#allocation5 + $0xc] ss:$16 sps:$4 sm:$0xff]   ;;  %v666_v31 = vld [vmem:[#allocation5] ss:$16 sps:$4 sm:$0xff]  }
  0x33   :  { %354 = vmatpush1.bf16.msra.mxu0 %v636_v11  ;;  %427 = vmatpush1.bf16.msra.mxu1 %v637_v12  ;;  %v667_v32 = vld [vmem:[#allocation5 + $0x8] ss:$16 sps:$4 sm:$0xff]   ;;  %v145_v33 = vld [vmem:[#allocation2] sm:$0xff]  ;;  %v147_v36 = vld [vmem:[#allocation2 + $0x10] sm:$0xff]  ;;  %v62_v46 = vshrl.u32 %v61_v45, 7  ;;  %s762_s0 = smov [#allocation8]  }
  0x34   :  { %355 = vmatprep.subr.bf16.mxu0 %v638_v13  ;;  %428 = vmatprep.subr.bf16.mxu1 %v640_v14  ;;  %v153_v35 = vpack.c.bf16 %v146_v34, %v145_v33  ;;  %v148_v37 = vld [vmem:[#allocation2 + $0x18] sm:$0xff]  ;;  %v149_v39 = vld [vmem:[#allocation2 + $0x20] sm:$0xff]  ;;  %v150_v40 = vld [vmem:[#allocation2 + $0x28] sm:$0xff]  ;;  %s564_s2 = sshll.u32 %s762_s0, 4  ;;  %s565_s2 = int_to_ptr.vmem [resolvable:$true] %s564_s2 }
  0x35   :  { %v154_v38 = vpack.c.bf16 %v148_v37, %v147_v36  ;;  %v155_v41 = vpack.c.bf16 %v150_v40, %v149_v39  ;;  %v151_v42 = vld [vmem:[#allocation2 + $0x30] sm:$0xff]  ;;  %v152_v43 = vld [vmem:[#allocation2 + $0x38] sm:$0xff]  ;;  %v63_v47 = vsub.s32 0, %v62_v46  ;;  %v71_v48 = vsub.s32 2, %v62_v46  ;;  %v59_v49 = vld [vmem:[#allocation7] sm:$0xf]  ;;  %p733_p2 = scmp.lt.s32.totalorder %s565_s2, %s565_s2 }
  0x36   :  { %v156_v44 = vpack.c.bf16 %v152_v43, %v151_v42  ;;  %v67_v50 = vsub.s32 1, %v62_v46  ;;  %v75_v51 = vsub.s32 3, %v62_v46  ;;  %s728_s30 = scalar_lea.vmem %s565_s2, 4096 }
  0x37   :  { %356 = vmatpush1.bf16.msra.mxu0 %v642_v15  ;;  %429 = vmatpush1.bf16.msra.mxu1 %v643_v16  ;;  %v802_v52 = vrot.slane %v59_v49, %v63_v47  ;;  %v804_v53 = vrot.slane %v59_v49, %v71_v48  ;;  %p729_p1 = scmp.ne.s32.totalorder %s565_s2, %s728_s30  ;;  %p734_p3 = scmp.lt.s32.totalorder %s728_s30, %s728_s30 }
  0x38   :  { %357 = vmatprep.subr.bf16.mxu0 %v644_v17  ;;  %430 = vmatprep.subr.bf16.mxu1 %v646_v18  ;;  %v806_v54 = vrot.slane %v59_v49, %v67_v50  ;;  %v808_v55 = vrot.slane %v59_v49, %v75_v51 }
  0x39   :  { %p735_p4 = por %p734_p3, %p733_p2 }
  0x3b   :  { %358 = vmatpush1.bf16.msra.mxu0 %v648_v19  ;;  %431 = vmatpush1.bf16.msra.mxu1 %v649_v20  ;;  %p736_p5 = pnand %p735_p4, %p729_p1 }
  0x3c   :  { %359 = vmatprep.subr.bf16.mxu0 %v650_v21  ;;  %432 = vmatprep.subr.bf16.mxu1 %v652_v22 }
  0x3f   :  { %360 = vmatpush1.bf16.msra.mxu0 %v654_v23  ;;  %433 = vmatpush1.bf16.msra.mxu1 %v655_v24 }
  0x40   :  { %361 = vmatprep.subr.bf16.mxu0 %v656_v25  ;;  %434 = vmatprep.subr.bf16.mxu1 %v658_v26 }
  0x43   :  { %362 = vmatpush1.bf16.msra.mxu0 %v660_v27  ;;  %435 = vmatpush1.bf16.msra.mxu1 %v661_v28 }
  0x44   :  { %363 = vmatprep.subr.bf16.mxu0 %v662_v29  ;;  %436 = vmatprep.subr.bf16.mxu1 %v664_v30 }
  0x47   :  { %364 = vmatpush1.bf16.msra.mxu0 %v666_v31  ;;  %437 = vmatpush1.bf16.msra.mxu1 %v667_v32 }
  0x4a   :  { %382 = vmatmul.mubr.bf16.vlgmr.msra.gmra.mxu0 %v153_v35  ;;  %455 = vmatmul.mubr.bf16.vlgmr.msra.gmra.mxu1 %v153_v35 }
  0x4b   :  { %391 = vmatprep.mubr.bf16.mxu0 %v761_v0  ;;  %464 = vmatprep.mubr.bf16.mxu1 %v761_v0 }
  0x52   :  { %392 = vmatmul.mubr.bf16.gmra.mxu0 %v154_v38  ;;  %465 = vmatmul.mubr.bf16.gmra.mxu1 %v154_v38 }
  0x53   :  { %401 = vmatprep.mubr.bf16.mxu0 %v761_v0  ;;  %474 = vmatprep.mubr.bf16.mxu1 %v761_v0 }
  0x5a   :  { %402 = vmatmul.mubr.bf16.gmra.mxu0 %v155_v41  ;;  %475 = vmatmul.mubr.bf16.gmra.mxu1 %v155_v41 }
  0x5b   :  { %411 = vmatprep.mubr.bf16.mxu0 %v761_v0  ;;  %484 = vmatprep.mubr.bf16.mxu1 %v761_v0 }
  0x62   :  { %412 = vmatmul.mubr.bf16.gmra.mxu0 %v156_v44  ;;  %485 = vmatmul.mubr.bf16.gmra.mxu1 %v156_v44 }
 0x10a   :  { %v383_v56 = vpop.f32.mrf.mxu0  ;;  %v456_v57 = vpop.f32.mrf.mxu1 }
 0x10b   :  { %v495_v58 = vadd.f32 %v383_v56, %v802_v52  ;;  %v497_v59 = vadd.f32 %v456_v57, %v804_v53 }
 0x10c   :  { %v385_v60 = vpop.f32.mrf.mxu0  ;;  %v458_v61 = vpop.f32.mrf.mxu1 }
 0x10d   :  { %527 = vst [vmem:[#allocation8] sm:$0xff] %v495_v58  ;;  %529 = vst [vmem:[#allocation8 + $0x10] sm:$0xff] %v497_v59  ;;  %v496_v62 = vadd.f32 %v385_v60, %v806_v54  ;;  %v498_v63 = vadd.f32 %v458_v61, %v808_v55 }
 0x10e   :  { %v387_v0 = vpop.f32.mrf.mxu0  ;;  %v460_v1 = vpop.f32.mrf.mxu1 }
 0x10f   :  { %528 = vst [vmem:[#allocation8 + $0x8] sm:$0xff] %v496_v62  ;;  %530 = vst [vmem:[#allocation8 + $0x18] sm:$0xff] %v498_v63  ;;  %v499_v2 = vadd.f32 %v387_v0, %v802_v52  ;;  %v501_v3 = vadd.f32 %v460_v1, %v804_v53 }
 0x110   :  { %v389_v4 = vpop.f32.mrf.mxu0  ;;  %v462_v5 = vpop.f32.mrf.mxu1 }
 0x111   :  { %531 = vst [vmem:[#allocation8 + $0x20] sm:$0xff] %v499_v2  ;;  %533 = vst [vmem:[#allocation8 + $0x30] sm:$0xff] %v501_v3  ;;  %v500_v6 = vadd.f32 %v389_v4, %v806_v54  ;;  %v502_v7 = vadd.f32 %v462_v5, %v808_v55 }
 0x112   :  { %v393_v8 = vpop.f32.mrf.mxu0  ;;  %v466_v9 = vpop.f32.mrf.mxu1 }
 0x113   :  { %532 = vst [vmem:[#allocation8 + $0x28] sm:$0xff] %v500_v6  ;;  %534 = vst [vmem:[#allocation8 + $0x38] sm:$0xff] %v502_v7  ;;  %v503_v10 = vadd.f32 %v393_v8, %v802_v52  ;;  %v505_v11 = vadd.f32 %v466_v9, %v804_v53 }
 0x114   :  { %v395_v12 = vpop.f32.mrf.mxu0  ;;  %v468_v13 = vpop.f32.mrf.mxu1 }
 0x115   :  { %535 = vst [vmem:[#allocation8 + $0x40] sm:$0xff] %v503_v10  ;;  %537 = vst [vmem:[#allocation8 + $0x50] sm:$0xff] %v505_v11  ;;  %v504_v14 = vadd.f32 %v395_v12, %v806_v54  ;;  %v506_v15 = vadd.f32 %v468_v13, %v808_v55 }
 0x116   :  { %v397_v16 = vpop.f32.mrf.mxu0  ;;  %v470_v17 = vpop.f32.mrf.mxu1 }
 0x117   :  { %536 = vst [vmem:[#allocation8 + $0x48] sm:$0xff] %v504_v14  ;;  %538 = vst [vmem:[#allocation8 + $0x58] sm:$0xff] %v506_v15  ;;  %v507_v18 = vadd.f32 %v397_v16, %v802_v52  ;;  %v509_v19 = vadd.f32 %v470_v17, %v804_v53 }
 0x118   :  { %v399_v20 = vpop.f32.mrf.mxu0  ;;  %v472_v21 = vpop.f32.mrf.mxu1 }
 0x119   :  { %539 = vst [vmem:[#allocation8 + $0x60] sm:$0xff] %v507_v18  ;;  %541 = vst [vmem:[#allocation8 + $0x70] sm:$0xff] %v509_v19  ;;  %v508_v22 = vadd.f32 %v399_v20, %v806_v54  ;;  %v510_v23 = vadd.f32 %v472_v21, %v808_v55 }
 0x11a   :  { %v403_v24 = vpop.f32.mrf.mxu0  ;;  %v476_v25 = vpop.f32.mrf.mxu1 }
 0x11b   :  { %540 = vst [vmem:[#allocation8 + $0x68] sm:$0xff] %v508_v22  ;;  %542 = vst [vmem:[#allocation8 + $0x78] sm:$0xff] %v510_v23  ;;  %v511_v26 = vadd.f32 %v403_v24, %v802_v52  ;;  %v513_v27 = vadd.f32 %v476_v25, %v804_v53 }
 0x11c   :  { %v405_v28 = vpop.f32.mrf.mxu0  ;;  %v478_v29 = vpop.f32.mrf.mxu1 }
 0x11d   :  { %543 = vst [vmem:[#allocation8 + $0x80] sm:$0xff] %v511_v26  ;;  %545 = vst [vmem:[#allocation8 + $0x90] sm:$0xff] %v513_v27  ;;  %v512_v30 = vadd.f32 %v405_v28, %v806_v54  ;;  %v514_v31 = vadd.f32 %v478_v29, %v808_v55 }
 0x11e   :  { %v407_v32 = vpop.f32.mrf.mxu0  ;;  %v480_v33 = vpop.f32.mrf.mxu1 }
 0x11f   :  { %544 = vst [vmem:[#allocation8 + $0x88] sm:$0xff] %v512_v30  ;;  %546 = vst [vmem:[#allocation8 + $0x98] sm:$0xff] %v514_v31  ;;  %v515_v34 = vadd.f32 %v407_v32, %v802_v52  ;;  %v517_v35 = vadd.f32 %v480_v33, %v804_v53 }
 0x120   :  { %v409_v36 = vpop.f32.mrf.mxu0  ;;  %v482_v37 = vpop.f32.mrf.mxu1 }
 0x121   :  { %547 = vst [vmem:[#allocation8 + $0xa0] sm:$0xff] %v515_v34  ;;  %549 = vst [vmem:[#allocation8 + $0xb0] sm:$0xff] %v517_v35  ;;  %v516_v38 = vadd.f32 %v409_v36, %v806_v54  ;;  %v518_v39 = vadd.f32 %v482_v37, %v808_v55 }
 0x122   :  { %v413_v40 = vpop.f32.mrf.mxu0  ;;  %v486_v41 = vpop.f32.mrf.mxu1 }
 0x123   :  { %548 = vst [vmem:[#allocation8 + $0xa8] sm:$0xff] %v516_v38  ;;  %550 = vst [vmem:[#allocation8 + $0xb8] sm:$0xff] %v518_v39  ;;  %v519_v42 = vadd.f32 %v413_v40, %v802_v52  ;;  %v521_v43 = vadd.f32 %v486_v41, %v804_v53 }
 0x124   :  { %v415_v44 = vpop.f32.mrf.mxu0  ;;  %v488_v45 = vpop.f32.mrf.mxu1 }
 0x125   :  { %551 = vst [vmem:[#allocation8 + $0xc0] sm:$0xff] %v519_v42  ;;  %553 = vst [vmem:[#allocation8 + $0xd0] sm:$0xff] %v521_v43  ;;  %v520_v46 = vadd.f32 %v415_v44, %v806_v54  ;;  %v522_v47 = vadd.f32 %v488_v45, %v808_v55 }
 0x126   :  { %v417_v48 = vpop.f32.mrf.mxu0  ;;  %v490_v49 = vpop.f32.mrf.mxu1 }
 0x127   :  { %552 = vst [vmem:[#allocation8 + $0xc8] sm:$0xff] %v520_v46  ;;  %554 = vst [vmem:[#allocation8 + $0xd8] sm:$0xff] %v522_v47  ;;  %v523_v50 = vadd.f32 %v417_v48, %v802_v52  ;;  %v525_v51 = vadd.f32 %v490_v49, %v804_v53 }
 0x128   :  { %v419_v56 = vpop.f32.mrf.mxu0  ;;  %v492_v57 = vpop.f32.mrf.mxu1 }
 0x129   :  { %555 = vst [vmem:[#allocation8 + $0xe0] sm:$0xff] %v523_v50  ;;  %557 = vst [vmem:[#allocation8 + $0xf0] sm:$0xff] %v525_v51  ;;  %v524_v58 = vadd.f32 %v419_v56, %v806_v54  ;;  %v526_v59 = vadd.f32 %v492_v57, %v808_v55 }
 0x12b   :  { %556 = vst [vmem:[#allocation8 + $0xe8] sm:$0xff] %v524_v58  ;;  %558 = vst [vmem:[#allocation8 + $0xf8] sm:$0xff] %v526_v59 }
 0x12c   :  { %739 = shalt.err (!%p736_p5)
}
 0x12d   :  { %s763_s4 = smov 512   ;;  %s764_s5 = smov 32  }
 0x12e   :  { %570 = dma.vmem_to_hbm [thread:$0]  %s565_s2, 4096, %s848_s3, [#allocation4], %s763_s4, %s763_s4, %s764_s5  }
 0x12f   :  { %752 = dma.done.wait [#allocation4], 4096  }
 0x130   :  { %753 = vsyncadd [#allocation4], 4294963200 }
 0x131   :  { %574 = vsyncpa [#allocation3], 1 }
 0x132   :  { %575 = vsyncpa [#allocation6], 1 }
 0x133   :  { %576 = vsyncpa [#allocation4], 1 }

</bundles_post_ra>
